<compile_context>
chip_gen: v5e
topology: v5e:2x2
jax: 0.10.0
libtpu: 0.0.40
codegen_flags: <defaults>
</compile_context>

<pallas_src>
import functools
import math

import numpy as np
import jax
import jax.numpy as jnp
from jax.experimental import pallas as pl
from jax.experimental.pallas import tpu as pltpu

# ---- module configuration (HardVoxelization.__init__ parameters) ------------
VOXEL_SIZE = (1.0, 1.0, 0.5)
PC_RANGE = (0.0, 0.0, 0.0, 4.0, 4.0, 2.0)
MAX_NUM_POINTS = 4                 # MAXP: points per voxel
MAX_VOXELS = 32                    # MAXV: max voxels (train == infer)

GRID_SIZE = tuple(
    int(round((PC_RANGE[3 + i] - PC_RANGE[i]) / VOXEL_SIZE[i])) for i in range(3)
)
NX, NY, NZ = GRID_SIZE
NCELLS = NX * NY * NZ
SENTINEL = NCELLS                  # > any valid linear voxel id

MAXP = MAX_NUM_POINTS
MAXV = MAX_VOXELS

LANE = 128                         # TPU vreg lane width
MAX_TILE_R = 512                   # kernel-1 rows per tile -> 512*128 = 65536 pts/step
TILE2 = 256                        # kernel-2 points per tile (fills v6e/v7x 256-wide MXU)

_INV_VS = tuple(1.0 / v for v in VOXEL_SIZE)
# reciprocal-multiply is only bit-exact when voxel sizes are powers of two;
# otherwise fall back to a real divide (correctness guard from review).
_USE_RECIP = all(math.frexp(v)[0] == 0.5 for v in VOXEL_SIZE)


# ---------------- kernel 1: per-point linear voxel id (vector hot path) ------
def _voxel_index_kernel(pts_ref, lin_ref):
    # pts_ref: (3, TILE_R, 128) f32  xyz only; point axis fills sublanes + lanes
    # lin_ref: (TILE_R, 128)    i32  linear voxel id, SENTINEL if out of range
    x = pts_ref[0]
    y = pts_ref[1]
    z = pts_ref[2]
    if _USE_RECIP:
        fx = (x - PC_RANGE[0]) * _INV_VS[0]
        fy = (y - PC_RANGE[1]) * _INV_VS[1]
        fz = (z - PC_RANGE[2]) * _INV_VS[2]
    else:
        fx = (x - PC_RANGE[0]) / VOXEL_SIZE[0]
        fy = (y - PC_RANGE[1]) / VOXEL_SIZE[1]
        fz = (z - PC_RANGE[2]) / VOXEL_SIZE[2]
    ix = jnp.floor(fx).astype(jnp.int32)
    iy = jnp.floor(fy).astype(jnp.int32)
    iz = jnp.floor(fz).astype(jnp.int32)
    valid = ((ix >= 0) & (ix < NX)
             & (iy >= 0) & (iy < NY)
             & (iz >= 0) & (iz < NZ))
    lin = ix * (NY * NZ) + iy * NZ + iz
    lin_ref[...] = jnp.where(valid, lin, SENTINEL).astype(jnp.int32)


# ---------------- kernel 2: vectorized slot assignment (MXU prefix count) ----
def _slot_assign_kernel(inv_ref, tri_ref, slot_ref, cnt_ref, carry_ref):
    # inv_ref  : (1, 1, TILE2)  i32  voxel row per point (MAXV == dropped / padding)
    # tri_ref  : (TILE2, TILE2) f32  strictly-upper-triangular ones (resident block)
    # slot_ref : (1, 1, TILE2)  i32  out: slot within the voxel (-1 if point dropped)
    # cnt_ref  : (MAXV, 1)      i32  out: saturated num_points_per_voxel
    # carry_ref: (MAXV, 1)      f32  scratch: running per-voxel arrival count
    @pl.when(pl.program_id(0) == 0)
    def _():
        carry_ref[...] = jnp.zeros_like(carry_ref)

    inv_row = inv_ref[...].reshape(1, TILE2)                        # (1, TILE2)
    vox = jax.lax.broadcasted_iota(jnp.int32, (MAXV, TILE2), 0)
    onehot = (inv_row == vox).astype(jnp.float32)                   # (MAXV, TILE2)

    # within-tile exclusive arrival rank per (voxel, point): one MXU matmul.
    prefix = jnp.dot(onehot, tri_ref[...],
                     preferred_element_type=jnp.float32)            # (MAXV, TILE2)
    carry = carry_ref[...]                                          # (MAXV, 1)
    excl = jnp.sum(onehot * (prefix + carry), axis=0, keepdims=True)  # (1, TILE2)
    excl_i = excl.astype(jnp.int32)                                 # exact small ints

    valid = inv_row < MAXV
    slot = jnp.where(valid & (excl_i < MAXP), excl_i, -1)
    slot_ref[...] = slot.reshape(1, 1, TILE2)

    new_carry = carry + jnp.sum(onehot, axis=1, keepdims=True)      # (MAXV, 1)
    carry_ref[...] = new_carry
    cnt_ref[...] = jnp.minimum(new_carry, float(MAXP)).astype(jnp.int32)


# ---------------- wrapper (forward pass) --------------------------------------
@functools.partial(jax.jit, static_argnames=("is_training",))
def voxelization_forward(points, is_training=True):
    """JAX/Pallas equivalent of Voxelization.forward.

    points: (N, 3+C) f32.
    Returns padded device arrays (no host sync):
      voxels (MAXV, MAXP, 3+C) f32, coordinates (MAXV, 3) i32,
      num_points_per_voxel (MAXV,) i32, num_voxels () i32.
    Rows >= num_voxels are zero; slice lazily on the caller side if needed.
    """
    del is_training                  # max_voxels_train == max_voxels_infer here
    n, ndim = points.shape

    # ---- kernel 1: lane+sublane dense, big tiles, xyz columns only ----------
    rows = -(-n // LANE)
    tile_r = min(MAX_TILE_R, -(-rows // 8) * 8)          # multiple of 8, capped
    rows_pad = -(-rows // tile_r) * tile_r
    n_pad = rows_pad * LANE

    pts_t = points[:, :3].astype(jnp.float32).T           # (3, n) xyz only
    pts_t = jnp.pad(pts_t, ((0, 0), (0, n_pad - n)),
                    constant_values=PC_RANGE[0] - 1.0)    # pad -> out of range
    pts3 = pts_t.reshape(3, rows_pad, LANE)

    lin2d = pl.pallas_call(
        _voxel_index_kernel,
        out_shape=jax.ShapeDtypeStruct((rows_pad, LANE), jnp.int32),
        grid=(rows_pad // tile_r,),
        in_specs=[pl.BlockSpec((3, tile_r, LANE), lambda i: (0, i, 0))],
        out_specs=pl.BlockSpec((tile_r, LANE), lambda i: (i, 0)),
        compiler_params=pltpu.CompilerParams(dimension_semantics=("parallel",)),
    )(pts3)
    lin = lin2d.reshape(-1)[:n]

    # ---- glue: dense occupancy histogram over the small voxel grid ----------
    # TODO(synk): for configs with a huge NX*NY*NZ this should fall back to a
    # jnp.unique(size=MAXV) path; here NCELLS == 64 so the histogram is trivial.
    present = jnp.zeros((NCELLS,), jnp.int32).at[lin].set(1, mode="drop")
    rank = jnp.cumsum(present) - present                   # exclusive prefix
    num_unique = jnp.sum(present)
    num_voxels = jnp.minimum(num_unique, MAXV).astype(jnp.int32)

    rank_at = rank[jnp.minimum(lin, NCELLS - 1)]
    inverse = jnp.where((lin < NCELLS) & (rank_at < MAXV),
                        rank_at, MAXV).astype(jnp.int32)

    cells = jnp.arange(NCELLS, dtype=jnp.int32)
    scatter_pos = jnp.where((present > 0) & (rank < MAXV), rank, MAXV)
    u = jnp.full((MAXV,), SENTINEL, jnp.int32).at[scatter_pos].set(cells, mode="drop")
    coords_full = jnp.where(
        (u < SENTINEL)[:, None],
        jnp.stack([u // (NY * NZ), (u // NZ) % NY, u % NZ], axis=1),
        0,
    ).astype(jnp.int32)

    # ---- kernel 2: blocked one-hot + triangular-MXU prefix-count ------------
    num_t2 = -(-n // TILE2)
    n2_pad = num_t2 * TILE2
    inv_pad = jnp.pad(inverse, (0, n2_pad - n), constant_values=MAXV)
    inv3 = inv_pad.reshape(num_t2, 1, TILE2)
    tri = jnp.triu(jnp.ones((TILE2, TILE2), jnp.float32), k=1)   # strict upper

    slot3, cnt2 = pl.pallas_call(
        _slot_assign_kernel,
        out_shape=(jax.ShapeDtypeStruct((num_t2, 1, TILE2), jnp.int32),
                   jax.ShapeDtypeStruct((MAXV, 1), jnp.int32)),
        grid=(num_t2,),
        in_specs=[pl.BlockSpec((1, 1, TILE2), lambda i: (i, 0, 0)),
                  pl.BlockSpec((TILE2, TILE2), lambda i: (0, 0))],   # resident
        out_specs=(pl.BlockSpec((1, 1, TILE2), lambda i: (i, 0, 0)),
                   pl.BlockSpec((MAXV, 1), lambda i: (0, 0))),
        scratch_shapes=[pltpu.VMEM((MAXV, 1), jnp.float32)],
        compiler_params=pltpu.CompilerParams(dimension_semantics=("arbitrary",)),
    )(inv3, tri)
    slot = slot3.reshape(-1)[:n]
    cnt = cnt2.reshape(MAXV)

    # ---- unique-index vectorized point scatter into the voxel buffer --------
    drop_idx = MAXV * MAXP + jnp.arange(n, dtype=jnp.int32)   # unique OOB indices
    flat_idx = jnp.where(slot >= 0, inverse * MAXP + slot, drop_idx)
    voxels_full = (
        jnp.zeros((MAXV * MAXP, ndim), jnp.float32)
        .at[flat_idx]
        .set(points.astype(jnp.float32), mode="drop", unique_indices=True)
        .reshape(MAXV, MAXP, ndim)
    )

    return voxels_full, coords_full, cnt, num_voxels


# ---------------- numpy reference (mirrors the PyTorch loop) ------------------
def _reference_numpy(points_np):
    vs = np.asarray(VOXEL_SIZE, np.float32)
    low = np.asarray(PC_RANGE[:3], np.float32)
    grid = np.asarray(GRID_SIZE, np.int32)
    vidx = np.floor((points_np[:, :3] - low) / vs).astype(np.int32)
    mask = np.all((vidx >= 0) & (vidx < grid), axis=1)
    pts = points_np[mask]
    vidx = vidx[mask]
    uniq, inverse = np.unique(vidx, axis=0, return_inverse=True)
    num_voxels = min(uniq.shape[0], MAX_VOXELS)
    voxels = np.zeros((num_voxels, MAXP, points_np.shape[1]), np.float32)
    coords = np.zeros((num_voxels, 3), np.int32)
    nppv = np.zeros((num_voxels,), np.int32)
    for i in range(pts.shape[0]):
        idx = inverse[i]
        if idx < num_voxels and nppv[idx] < MAXP:
            voxels[idx, nppv[idx]] = pts[i]
            nppv[idx] += 1
    coords[:num_voxels] = uniq[:num_voxels]
    return voxels, coords, nppv


if __name__ == "__main__":
    key = jax.random.PRNGKey(0)
    k1, k2 = jax.random.split(key)
    n_points, ndim = 256, 4  # (N, 3 + C) with C = 1 extra feature

    xyz = jax.random.uniform(
        k1, (n_points, 3), dtype=jnp.float32,
        minval=jnp.array([-0.5, -0.5, -0.25], jnp.float32),
        maxval=jnp.array([4.5, 4.5, 2.25], jnp.float32),
    )
    feat = jax.random.normal(k2, (n_points, 1), dtype=jnp.float32)
    points = jnp.concatenate([xyz, feat], axis=1)

    voxels_full, coords_full, cnt_full, num_voxels = jax.block_until_ready(
        voxelization_forward(points, is_training=True)
    )

    # host-side verification against a numpy mirror of the PyTorch loop
    nv = int(num_voxels)
    voxels = np.asarray(voxels_full)[:nv]
    coords = np.asarray(coords_full)[:nv]
    nppv = np.asarray(cnt_full)[:nv]

    v_ref, c_ref, n_ref = _reference_numpy(np.asarray(points))
    assert voxels.shape == v_ref.shape
    assert coords.shape == c_ref.shape
    assert nppv.shape == n_ref.shape
    np.testing.assert_array_equal(coords, c_ref)
    np.testing.assert_array_equal(nppv, n_ref)
    np.testing.assert_allclose(voxels, v_ref, rtol=0, atol=0)
    print("KERNEL_OK")
</pallas_src>

<mosaic_0001>
module attributes {stable_mosaic.version = 11 : i64} {
  func.func @_voxel_index_kernel(%arg0: i32, %arg1: memref<3x8x128xf32, #tpu.memory_space<vmem>>, %arg2: memref<8x128xi32, #tpu.memory_space<vmem>>) attributes {dimension_semantics = [#tpu.dimension_semantics<parallel>], iteration_bounds = array<i64: 1>, scalar_prefetch = 0 : i64, scratch_operands = 0 : i64, tpu.core_type = #tpu.core_type<tc>, window_params = [{transform_indices = @transform_0, window_bounds = array<i64: 3, 8, 128>}, {transform_indices = @transform_1, window_bounds = array<i64: 8, 128>}]} {
    %c0 = arith.constant 0 : index
    %c0_0 = arith.constant 0 : index
    %c0_1 = arith.constant 0 : index
    %0 = vector.load %arg1[%c0, %c0_0, %c0_1] : memref<3x8x128xf32, #tpu.memory_space<vmem>>, vector<1x8x128xf32>
    %1 = vector.shape_cast %0 : vector<1x8x128xf32> to vector<8x128xf32>
    %c1 = arith.constant 1 : index
    %c0_2 = arith.constant 0 : index
    %c0_3 = arith.constant 0 : index
    %2 = vector.load %arg1[%c1, %c0_2, %c0_3] : memref<3x8x128xf32, #tpu.memory_space<vmem>>, vector<1x8x128xf32>
    %3 = vector.shape_cast %2 : vector<1x8x128xf32> to vector<8x128xf32>
    %c2 = arith.constant 2 : index
    %c0_4 = arith.constant 0 : index
    %c0_5 = arith.constant 0 : index
    %4 = vector.load %arg1[%c2, %c0_4, %c0_5] : memref<3x8x128xf32, #tpu.memory_space<vmem>>, vector<1x8x128xf32>
    %5 = vector.shape_cast %4 : vector<1x8x128xf32> to vector<8x128xf32>
    %cst = arith.constant 0.000000e+00 : f32
    %6 = vector.broadcast %cst : f32 to vector<8x128xf32>
    %7 = arith.subf %1, %6 : vector<8x128xf32>
    %cst_6 = arith.constant 1.000000e+00 : f32
    %8 = vector.broadcast %cst_6 : f32 to vector<8x128xf32>
    %9 = arith.mulf %7, %8 : vector<8x128xf32>
    %cst_7 = arith.constant 0.000000e+00 : f32
    %10 = vector.broadcast %cst_7 : f32 to vector<8x128xf32>
    %11 = arith.subf %3, %10 : vector<8x128xf32>
    %cst_8 = arith.constant 1.000000e+00 : f32
    %12 = vector.broadcast %cst_8 : f32 to vector<8x128xf32>
    %13 = arith.mulf %11, %12 : vector<8x128xf32>
    %cst_9 = arith.constant 0.000000e+00 : f32
    %14 = vector.broadcast %cst_9 : f32 to vector<8x128xf32>
    %15 = arith.subf %5, %14 : vector<8x128xf32>
    %cst_10 = arith.constant 2.000000e+00 : f32
    %16 = vector.broadcast %cst_10 : f32 to vector<8x128xf32>
    %17 = arith.mulf %15, %16 : vector<8x128xf32>
    %18 = math.floor %9 : vector<8x128xf32>
    %19 = arith.fptosi %18 : vector<8x128xf32> to vector<8x128xi32>
    %20 = math.floor %13 : vector<8x128xf32>
    %21 = arith.fptosi %20 : vector<8x128xf32> to vector<8x128xi32>
    %22 = math.floor %17 : vector<8x128xf32>
    %23 = arith.fptosi %22 : vector<8x128xf32> to vector<8x128xi32>
    %c0_i32 = arith.constant 0 : i32
    %24 = vector.broadcast %c0_i32 : i32 to vector<8x128xi32>
    %25 = arith.cmpi sge, %19, %24 : vector<8x128xi32>
    %c4_i32 = arith.constant 4 : i32
    %26 = vector.broadcast %c4_i32 : i32 to vector<8x128xi32>
    %27 = arith.cmpi slt, %19, %26 : vector<8x128xi32>
    %28 = arith.andi %25, %27 : vector<8x128xi1>
    %c0_i32_11 = arith.constant 0 : i32
    %29 = vector.broadcast %c0_i32_11 : i32 to vector<8x128xi32>
    %30 = arith.cmpi sge, %21, %29 : vector<8x128xi32>
    %31 = arith.andi %28, %30 : vector<8x128xi1>
    %c4_i32_12 = arith.constant 4 : i32
    %32 = vector.broadcast %c4_i32_12 : i32 to vector<8x128xi32>
    %33 = arith.cmpi slt, %21, %32 : vector<8x128xi32>
    %34 = arith.andi %31, %33 : vector<8x128xi1>
    %c0_i32_13 = arith.constant 0 : i32
    %35 = vector.broadcast %c0_i32_13 : i32 to vector<8x128xi32>
    %36 = arith.cmpi sge, %23, %35 : vector<8x128xi32>
    %37 = arith.andi %34, %36 : vector<8x128xi1>
    %c4_i32_14 = arith.constant 4 : i32
    %38 = vector.broadcast %c4_i32_14 : i32 to vector<8x128xi32>
    %39 = arith.cmpi slt, %23, %38 : vector<8x128xi32>
    %40 = arith.andi %37, %39 : vector<8x128xi1>
    %c16_i32 = arith.constant 16 : i32
    %41 = vector.broadcast %c16_i32 : i32 to vector<8x128xi32>
    %42 = arith.muli %19, %41 : vector<8x128xi32>
    %c4_i32_15 = arith.constant 4 : i32
    %43 = vector.broadcast %c4_i32_15 : i32 to vector<8x128xi32>
    %44 = arith.muli %21, %43 : vector<8x128xi32>
    %45 = arith.addi %42, %44 : vector<8x128xi32>
    %46 = arith.addi %45, %23 : vector<8x128xi32>
    %c64_i32 = arith.constant 64 : i32
    %47 = vector.broadcast %c64_i32 : i32 to vector<8x128xi32>
    %48 = arith.select %40, %46, %47 : vector<8x128xi1>, vector<8x128xi32>
    %c0_16 = arith.constant 0 : index
    %c0_17 = arith.constant 0 : index
    %49 = vector.load %arg2[%c0_16, %c0_17] : memref<8x128xi32, #tpu.memory_space<vmem>>, vector<8x128xi32>
    tpu.vector_store %arg2[%c0_16, %c0_17], %48 {strides = array<i32>} : memref<8x128xi32, #tpu.memory_space<vmem>>, vector<8x128xi32>,
    return
  }
  func.func @transform_0(%arg0: i32) -> (i32, i32, i32) {
    %c0_i32 = arith.constant 0 : i32
    %c0_i32_0 = arith.constant 0 : i32
    %c0_i32_1 = arith.constant 0 : i32
    return %c0_i32, %arg0, %c0_i32_0 : i32, i32, i32
  }
  func.func @transform_1(%arg0: i32) -> (i32, i32) {
    %c0_i32 = arith.constant 0 : i32
    %c0_i32_0 = arith.constant 0 : i32
    return %arg0, %c0_i32 : i32, i32
  }
}

module attributes {stable_mosaic.version = 11 : i64} {
  func.func @_slot_assign_kernel(%arg0: i32, %arg1: memref<1x1x256xi32, #tpu.memory_space<vmem>>, %arg2: memref<256x256xf32, #tpu.memory_space<vmem>>, %arg3: memref<1x1x256xi32, #tpu.memory_space<vmem>>, %arg4: memref<32x1xi32, #tpu.memory_space<vmem>>, %arg5: memref<32x1xf32, #tpu.memory_space<vmem>>) attributes {dimension_semantics = [#tpu.dimension_semantics<arbitrary>], iteration_bounds = array<i64: 1>, scalar_prefetch = 0 : i64, scratch_operands = 1 : i64, tpu.core_type = #tpu.core_type<tc>, window_params = [{transform_indices = @transform_0, window_bounds = array<i64: 1, 1, 256>}, {pipeline_mode = #tpu.pipeline_mode<synchronous>, transform_indices = @transform_1, window_bounds = array<i64: 256, 256>}, {transform_indices = @transform_2, window_bounds = array<i64: 1, 1, 256>}, {pipeline_mode = #tpu.pipeline_mode<synchronous>, transform_indices = @transform_3, window_bounds = array<i64: 32, 1>}]} {
    %c0_i32 = arith.constant 0 : i32
    %0 = arith.cmpi eq, %arg0, %c0_i32 : i32
    %1 = arith.extui %0 : i1 to i32
    %c0_i32_0 = arith.constant 0 : i32
    %2 = arith.cmpi ne, %1, %c0_i32_0 : i32
    scf.if %2 {
      %cst_17 = arith.constant 0.000000e+00 : f32
      %36 = vector.broadcast %cst_17 : f32 to vector<32x1xf32>
      %c0_18 = arith.constant 0 : index
      %c0_19 = arith.constant 0 : index
      %37 = vector.load %arg5[%c0_18, %c0_19] : memref<32x1xf32, #tpu.memory_space<vmem>>, vector<32x1xf32>
      tpu.vector_store %arg5[%c0_18, %c0_19], %36 {strides = array<i32>} : memref<32x1xf32, #tpu.memory_space<vmem>>, vector<32x1xf32>,
    } else {
    }
    %c0 = arith.constant 0 : index
    %c0_1 = arith.constant 0 : index
    %c0_2 = arith.constant 0 : index
    %3 = vector.load %arg1[%c0, %c0_1, %c0_2] : memref<1x1x256xi32, #tpu.memory_space<vmem>>, vector<1x1x256xi32>
    %4 = vector.shape_cast %3 : vector<1x1x256xi32> to vector<1x256xi32>
    %5 = tpu.iota {dimensions = array<i32: 0>} : vector<32x256xi32>
    %6 = vector.broadcast %4 : vector<1x256xi32> to vector<32x256xi32>
    %7 = arith.cmpi eq, %6, %5 : vector<32x256xi32>
    %8 = arith.extui %7 : vector<32x256xi1> to vector<32x256xi32>
    %9 = arith.sitofp %8 : vector<32x256xi32> to vector<32x256xf32>
    %c0_3 = arith.constant 0 : index
    %c0_4 = arith.constant 0 : index
    %10 = vector.load %arg2[%c0_3, %c0_4] : memref<256x256xf32, #tpu.memory_space<vmem>>, vector<256x256xf32>
    %cst = arith.constant dense<0.000000e+00> : vector<32x256xf32>
    %11 = tpu.matmul %9, %10, %cst {dimension_numbers = #tpu.dot_dimension_numbers<[1], [0], [0], [1], [0, 0, 1, 1], [], []>} : vector<32x256xf32>, vector<256x256xf32>, vector<32x256xf32> -> vector<32x256xf32>
    %c0_5 = arith.constant 0 : index
    %c0_6 = arith.constant 0 : index
    %12 = vector.load %arg5[%c0_5, %c0_6] : memref<32x1xf32, #tpu.memory_space<vmem>>, vector<32x1xf32>
    %13 = vector.broadcast %12 : vector<32x1xf32> to vector<32x256xf32>
    %14 = arith.addf %11, %13 : vector<32x256xf32>
    %15 = arith.mulf %9, %14 : vector<32x256xf32>
    %cst_7 = arith.constant dense<0.000000e+00> : vector<256xf32>
    %16 = vector.multi_reduction <add>, %15, %cst_7 [0] : vector<32x256xf32> to vector<256xf32>
    %17 = vector.shape_cast %16 : vector<256xf32> to vector<1x256xf32>
    %18 = arith.fptosi %17 : vector<1x256xf32> to vector<1x256xi32>
    %c32_i32 = arith.constant 32 : i32
    %19 = vector.broadcast %c32_i32 : i32 to vector<1x256xi32>
    %20 = arith.cmpi slt, %4, %19 : vector<1x256xi32>
    %c4_i32 = arith.constant 4 : i32
    %21 = vector.broadcast %c4_i32 : i32 to vector<1x256xi32>
    %22 = arith.cmpi slt, %18, %21 : vector<1x256xi32>
    %23 = arith.andi %20, %22 : vector<1x256xi1>
    %c-1_i32 = arith.constant -1 : i32
    %24 = vector.broadcast %c-1_i32 : i32 to vector<1x256xi32>
    %25 = arith.select %23, %18, %24 : vector<1x256xi1>, vector<1x256xi32>
    %26 = vector.shape_cast %25 : vector<1x256xi32> to vector<1x1x256xi32>
    %c0_8 = arith.constant 0 : index
    %c0_9 = arith.constant 0 : index
    %c0_10 = arith.constant 0 : index
    %27 = vector.load %arg3[%c0_8, %c0_9, %c0_10] : memref<1x1x256xi32, #tpu.memory_space<vmem>>, vector<1x1x256xi32>
    tpu.vector_store %arg3[%c0_8, %c0_9, %c0_10], %26 {strides = array<i32>} : memref<1x1x256xi32, #tpu.memory_space<vmem>>, vector<1x1x256xi32>,
    %cst_11 = arith.constant dense<0.000000e+00> : vector<32xf32>
    %28 = vector.multi_reduction <add>, %9, %cst_11 [1] : vector<32x256xf32> to vector<32xf32>
    %29 = vector.shape_cast %28 : vector<32xf32> to vector<32x1xf32>
    %30 = arith.addf %12, %29 : vector<32x1xf32>
    %c0_12 = arith.constant 0 : index
    %c0_13 = arith.constant 0 : index
    %31 = vector.load %arg5[%c0_12, %c0_13] : memref<32x1xf32, #tpu.memory_space<vmem>>, vector<32x1xf32>
    tpu.vector_store %arg5[%c0_12, %c0_13], %30 {strides = array<i32>} : memref<32x1xf32, #tpu.memory_space<vmem>>, vector<32x1xf32>,
    %cst_14 = arith.constant 4.000000e+00 : f32
    %32 = vector.broadcast %cst_14 : f32 to vector<32x1xf32>
    %33 = arith.minimumf %30, %32 : vector<32x1xf32>
    %34 = arith.fptosi %33 : vector<32x1xf32> to vector<32x1xi32>
    %c0_15 = arith.constant 0 : index
    %c0_16 = arith.constant 0 : index
    %35 = vector.load %arg4[%c0_15, %c0_16] : memref<32x1xi32, #tpu.memory_space<vmem>>, vector<32x1xi32>
    tpu.vector_store %arg4[%c0_15, %c0_16], %34 {strides = array<i32>} : memref<32x1xi32, #tpu.memory_space<vmem>>, vector<32x1xi32>,
    return
  }
  func.func @transform_0(%arg0: i32) -> (i32, i32, i32) {
    %c0_i32 = arith.constant 0 : i32
    %c0_i32_0 = arith.constant 0 : i32
    %c0_i32_1 = arith.constant 0 : i32
    return %arg0, %c0_i32, %c0_i32_0 : i32, i32, i32
  }
  func.func @transform_1(%arg0: i32) -> (i32, i32) {
    %c0_i32 = arith.constant 0 : i32
    %c0_i32_0 = arith.constant 0 : i32
    %c0_i32_1 = arith.constant 0 : i32
    return %c0_i32, %c0_i32_0 : i32, i32
  }
  func.func @transform_2(%arg0: i32) -> (i32, i32, i32) {
    %c0_i32 = arith.constant 0 : i32
    %c0_i32_0 = arith.constant 0 : i32
    %c0_i32_1 = arith.constant 0 : i32
    return %arg0, %c0_i32, %c0_i32_0 : i32, i32, i32
  }
  func.func @transform_3(%arg0: i32) -> (i32, i32) {
    %c0_i32 = arith.constant 0 : i32
    %c0_i32_0 = arith.constant 0 : i32
    %c0_i32_1 = arith.constant 0 : i32
    return %c0_i32, %c0_i32_0 : i32, i32
  }
}

</mosaic_0001>

<bundles_post_ra>
// kernel: voxelization_forward.2
= control target key start
LH: loop header
LB: loop body
LE: loop exit
PB: predicated region body
PF: predicated region fallthrough
CT: control target
= control target key end

     0   :  { %s71_s0 = inlined_call_operand.vmem [shape: f32[3,8,128], index: 0, kind: input, shape index: {}]   ;;  %s72_s1 = inlined_call_operand.vmem [shape: s32[8,128], index: 1, kind: output, shape index: {}]  }
   0x1   :  { %v8_v0 = vld [vmem:[%s71_s0] sm:$0xff]  ;;  %v41_v1 = vld [vmem:[%s71_s0 + $0x8] sm:$0xff]  ;;  %v42_v2 = vld [vmem:[%s71_s0 + $0x10] sm:$0xff] }
   0x2   :  { %v13_v3 = vmul.f32 2.0, %v42_v2  ;;  %v14_v4 = vfloor.f32 %v8_v0  ;;  %v16_v5 = vfloor.f32 %v41_v1 }
   0x4   :  { %v44_v6 = vcvt.f32.s32 %v14_v4  ;;  %v46_v7 = vcvt.f32.s32 %v16_v5  ;;  %v18_v8 = vfloor.f32 %v13_v3 }
   0x6   :  { %v48_v9 = vcvt.f32.s32 %v18_v8  ;;  %vm20_vm0 = vcmp.ge.s32.totalorder %v44_v6, 0  ;;  %vm21_vm1 = vcmp.lt.s32.totalorder %v44_v6, 4  ;;  %vm23_vm2 = vcmp.ge.s32.totalorder %v46_v7, 0 }
   0x7   :  { %vm22_vm3 = vmand %vm20_vm0, %vm21_vm1  ;;  %vm25_vm4 = vcmp.lt.s32.totalorder %v46_v7, 4  ;;  %v31_v10 = vmul.u32 16, %v44_v6  ;;  %v32_v11 = vmul.u32 4, %v46_v7 }
   0x8   :  { %vm24_vm5 = vmand %vm22_vm3, %vm23_vm2  ;;  %vm27_vm6 = vcmp.ge.s32.totalorder %v48_v9, 0  ;;  %vm29_vm7 = vcmp.lt.s32.totalorder %v48_v9, 4 }
   0x9   :  { %vm26_vm8 = vmand %vm24_vm5, %vm25_vm4  ;;  %v33_v12 = vadd.s32 %v32_v11, %v31_v10 }
   0xa   :  { %vm28_vm9 = vmand %vm26_vm8, %vm27_vm6 }
   0xb   :  { %vm30_vm10 = vmand %vm28_vm9, %vm29_vm7  ;;  %v34_v13 = vadd.s32 %v48_v9, %v33_v12 }
   0xd   :  { %v35_v14 = vsel %vm30_vm10, %v34_v13, 64 }
   0xe   :  { %36 = vst [vmem:[%s72_s1] sm:$0xff] %v35_v14 }

// kernel: voxelization_forward.3
= control target key start
LH: loop header
LB: loop body
LE: loop exit
PB: predicated region body
PF: predicated region fallthrough
CT: control target
= control target key end

     0   :  { %vm17_vm0 = vcmask 7168   ;;  %v404_v3 = vmov 0.0   ;;  %v23_v49 = vlaneseq  ;;  %s750_s1 = inlined_call_operand.vmem [shape: f32[256,256], index: 1, kind: input, shape index: {}]   ;;  %s751_s0 = inlined_call_operand.vmem [shape: s32[1,1,256], index: 0, kind: input, shape index: {}]   ;;  %s752_s3 = inlined_call_operand.vmem [shape: s32[32,1], index: 3, kind: output, shape index: {1}]   ;;  %s753_s2 = inlined_call_operand.vmem [shape: s32[1,1,256], index: 2, kind: output, shape index: {0}]  }
   0x1   :  { %v84_v0 = vld [vmem:[%s750_s1 + $0xf0] sm:$0xff]  ;;  %v85_v1 = vld [vmem:[%s750_s1 + $0xf8] sm:$0xff]  ;;  %v82_v2 = vld [vmem:[%s750_s1 + $0xe0] sm:$0xff]  ;;  %20 = vst.msk [vmem:[#allocation2 + $0x10] sm:$0xff] %vm17_vm0, %v404_v3 }
   0x2   :  { %142 = vmatpush.msra.mxu0 %v84_v0  ;;  %200 = vmatpush.msra.mxu2 %v85_v1  ;;  %v116_v4 = vld [vmem:[%s750_s1 + $0x1f0] sm:$0xff]  ;;  %v83_v5 = vld [vmem:[%s750_s1 + $0xe8] sm:$0xff]  ;;  %v117_v6 = vld [vmem:[%s750_s1 + $0x1f8] sm:$0xff]  ;;  %18 = vst.msk [vmem:[#allocation2] sm:$0xff] %vm17_vm0, %v404_v3  ;;  %v24_v59 = vshrl.u32 %v23_v49, 7 }
   0x3   :  { %171 = vmatpush.msra.mxu1 %v116_v4  ;;  %229 = vmatpush.msra.mxu3 %v117_v6  ;;  %v80_v7 = vld [vmem:[%s750_s1 + $0xd0] sm:$0xff]  ;;  %v114_v8 = vld [vmem:[%s750_s1 + $0x1e0] sm:$0xff]  ;;  %v81_v9 = vld [vmem:[%s750_s1 + $0xd8] sm:$0xff]  ;;  %19 = vst.msk [vmem:[#allocation2 + $0x8] sm:$0xff] %vm17_vm0, %v404_v3 }
   0x4   :  { %143 = vmatpush.msra.mxu0 %v82_v2  ;;  %201 = vmatpush.msra.mxu2 %v83_v5  ;;  %v115_v10 = vld [vmem:[%s750_s1 + $0x1e8] sm:$0xff]  ;;  %v112_v11 = vld [vmem:[%s750_s1 + $0x1d0] sm:$0xff]  ;;  %21 = vst.msk [vmem:[#allocation2 + $0x18] sm:$0xff] %vm17_vm0, %v404_v3  ;;  %v78_v12 = vld [vmem:[%s750_s1 + $0xc0] sm:$0xff] }
   0x5   :  { %172 = vmatpush.msra.mxu1 %v114_v8  ;;  %230 = vmatpush.msra.mxu3 %v115_v10  ;;  %v79_v13 = vld [vmem:[%s750_s1 + $0xc8] sm:$0xff]  ;;  %v113_v14 = vld [vmem:[%s750_s1 + $0x1d8] sm:$0xff]  ;;  %v110_v15 = vld [vmem:[%s750_s1 + $0x1c0] sm:$0xff] }
   0x6   :  { %144 = vmatpush.msra.mxu0 %v80_v7  ;;  %202 = vmatpush.msra.mxu2 %v81_v9  ;;  %v111_v16 = vld [vmem:[%s750_s1 + $0x1c8] sm:$0xff]  ;;  %v76_v17 = vld [vmem:[%s750_s1 + $0xb0] sm:$0xff]  ;;  %v77_v18 = vld [vmem:[%s750_s1 + $0xb8] sm:$0xff]  ;;  %v405_v9 = vmov 1.0  }
   0x7   :  { %173 = vmatpush.msra.mxu1 %v112_v11  ;;  %231 = vmatpush.msra.mxu3 %v113_v14  ;;  %v108_v19 = vld [vmem:[%s750_s1 + $0x1b0] sm:$0xff]  ;;  %v109_v20 = vld [vmem:[%s750_s1 + $0x1b8] sm:$0xff]  ;;  %v74_v21 = vld [vmem:[%s750_s1 + $0xa0] sm:$0xff]  ;;  %v406_v14 = vmov 0  }
   0x8   :  { %145 = vmatpush.msra.mxu0 %v78_v12  ;;  %203 = vmatpush.msra.mxu2 %v79_v13  ;;  %v75_v22 = vld [vmem:[%s750_s1 + $0xa8] sm:$0xff]  ;;  %v106_v23 = vld [vmem:[%s750_s1 + $0x1a0] sm:$0xff]  ;;  %v72_v25 = vld [vmem:[%s750_s1 + $0x90] sm:$0xff]  ;;  %v25_v12 = vadd.s32 8, %v24_v59 }
   0x9   :  { %174 = vmatpush.msra.mxu1 %v110_v15  ;;  %232 = vmatpush.msra.mxu3 %v111_v16  ;;  %v107_v24 = vld [vmem:[%s750_s1 + $0x1a8] sm:$0xff]  ;;  %v73_v26 = vld [vmem:[%s750_s1 + $0x98] sm:$0xff]  ;;  %v104_v27 = vld [vmem:[%s750_s1 + $0x190] sm:$0xff] }
   0xa   :  { %146 = vmatpush.msra.mxu0 %v76_v17  ;;  %204 = vmatpush.msra.mxu2 %v77_v18  ;;  %v105_v28 = vld [vmem:[%s750_s1 + $0x198] sm:$0xff]  ;;  %v70_v29 = vld [vmem:[%s750_s1 + $0x80] sm:$0xff]  ;;  %v71_v30 = vld [vmem:[%s750_s1 + $0x88] sm:$0xff]  ;;  %v26_v17 = vadd.s32 16, %v24_v59  ;;  %v27_v18 = vadd.s32 24, %v24_v59 }
   0xb   :  { %175 = vmatpush.msra.mxu1 %v108_v19  ;;  %233 = vmatpush.msra.mxu3 %v109_v20  ;;  %v102_v31 = vld [vmem:[%s750_s1 + $0x180] sm:$0xff]  ;;  %v103_v32 = vld [vmem:[%s750_s1 + $0x188] sm:$0xff]  ;;  %v68_v33 = vld [vmem:[%s750_s1 + $0x70] sm:$0xff] }
   0xc   :  { %147 = vmatpush.msra.mxu0 %v74_v21  ;;  %205 = vmatpush.msra.mxu2 %v75_v22  ;;  %v69_v34 = vld [vmem:[%s750_s1 + $0x78] sm:$0xff]  ;;  %v100_v35 = vld [vmem:[%s750_s1 + $0x170] sm:$0xff]  ;;  %v66_v37 = vld [vmem:[%s750_s1 + $0x60] sm:$0xff] }
   0xd   :  { %176 = vmatpush.msra.mxu1 %v106_v23  ;;  %234 = vmatpush.msra.mxu3 %v107_v24  ;;  %v101_v36 = vld [vmem:[%s750_s1 + $0x178] sm:$0xff]  ;;  %v67_v38 = vld [vmem:[%s750_s1 + $0x68] sm:$0xff]  ;;  %v98_v39 = vld [vmem:[%s750_s1 + $0x160] sm:$0xff] }
   0xe   :  { %148 = vmatpush.msra.mxu0 %v72_v25  ;;  %206 = vmatpush.msra.mxu2 %v73_v26  ;;  %v99_v40 = vld [vmem:[%s750_s1 + $0x168] sm:$0xff]  ;;  %v64_v41 = vld [vmem:[%s750_s1 + $0x50] sm:$0xff]  ;;  %v65_v42 = vld [vmem:[%s750_s1 + $0x58] sm:$0xff] }
   0xf   :  { %177 = vmatpush.msra.mxu1 %v104_v27  ;;  %235 = vmatpush.msra.mxu3 %v105_v28  ;;  %v96_v43 = vld [vmem:[%s750_s1 + $0x150] sm:$0xff]  ;;  %v97_v44 = vld [vmem:[%s750_s1 + $0x158] sm:$0xff]  ;;  %v62_v45 = vld [vmem:[%s750_s1 + $0x40] sm:$0xff] }
  0x10   :  { %149 = vmatpush.msra.mxu0 %v70_v29  ;;  %207 = vmatpush.msra.mxu2 %v71_v30  ;;  %v63_v46 = vld [vmem:[%s750_s1 + $0x48] sm:$0xff]  ;;  %v94_v47 = vld [vmem:[%s750_s1 + $0x140] sm:$0xff]  ;;  %v60_v50 = vld [vmem:[%s750_s1 + $0x30] sm:$0xff] }
  0x11   :  { %178 = vmatpush.msra.mxu1 %v102_v31  ;;  %236 = vmatpush.msra.mxu3 %v103_v32  ;;  %v95_v48 = vld [vmem:[%s750_s1 + $0x148] sm:$0xff]  ;;  %v61_v51 = vld [vmem:[%s750_s1 + $0x38] sm:$0xff]  ;;  %v588_v52 = vld [vmem:[%s751_s0] sm:$0x3] }
  0x12   :  { %150 = vmatpush.msra.mxu0 %v68_v33  ;;  %208 = vmatpush.msra.mxu2 %v69_v34  ;;  %v92_v53 = vld [vmem:[%s750_s1 + $0x130] sm:$0xff]  ;;  %v93_v54 = vld [vmem:[%s750_s1 + $0x138] sm:$0xff]  ;;  %v58_v55 = vld [vmem:[%s750_s1 + $0x20] sm:$0xff]  ;;  %v610_v60 = vperm.slane %v588_v52, 0  ;;  %v613_v61 = vperm.slane %v588_v52, 1 }
  0x13   :  { %179 = vmatpush.msra.mxu1 %v100_v35  ;;  %237 = vmatpush.msra.mxu3 %v101_v36  ;;  %v59_v56 = vld [vmem:[%s750_s1 + $0x28] sm:$0xff]  ;;  %v90_v57 = vld [vmem:[%s750_s1 + $0x120] sm:$0xff]  ;;  %v56_v62 = vld [vmem:[%s750_s1 + $0x10] sm:$0xff] }
  0x14   :  { %151 = vmatpush.msra.mxu0 %v66_v37  ;;  %209 = vmatpush.msra.mxu2 %v67_v38  ;;  %v91_v58 = vld [vmem:[%s750_s1 + $0x128] sm:$0xff]  ;;  %v57_v63 = vld [vmem:[%s750_s1 + $0x18] sm:$0xff]  ;;  %v88_v0 = vld [vmem:[%s750_s1 + $0x110] sm:$0xff]  ;;  %vm30_vm1 = vcmp.eq.s32.totalorder %v610_v60, %v24_v59  ;;  %vm31_vm2 = vcmp.eq.s32.totalorder %v613_v61, %v24_v59  ;;  %vm32_vm3 = vcmp.eq.s32.totalorder %v610_v60, %v25_v12 }
  0x15   :  { %180 = vmatpush.msra.mxu1 %v98_v39  ;;  %238 = vmatpush.msra.mxu3 %v99_v40  ;;  %v89_v1 = vld [vmem:[%s750_s1 + $0x118] sm:$0xff]  ;;  %v54_v2 = vld [vmem:[%s750_s1] sm:$0xff]  ;;  %v55_v4 = vld [vmem:[%s750_s1 + $0x8] sm:$0xff]  ;;  %v642_v7 = vsel %vm30_vm1, 1.0, %v404_v3  ;;  %v647_v8 = vsel %vm31_vm2, 1.0, %v404_v3  ;;  %vm33_vm4 = vcmp.eq.s32.totalorder %v613_v61, %v25_v12  ;;  %vm34_vm5 = vcmp.eq.s32.totalorder %v610_v60, %v26_v17 }
  0x16   :  { %152 = vmatpush.msra.mxu0 %v64_v41  ;;  %210 = vmatpush.msra.mxu2 %v65_v42  ;;  %v86_v5 = vld [vmem:[%s750_s1 + $0x100] sm:$0xff]  ;;  %v87_v6 = vld [vmem:[%s750_s1 + $0x108] sm:$0xff]  ;;  %v649_v10 = vld [vmem:[#allocation2 + $0x10] sm:$0xff]  ;;  %v304_v13 = vadd.f32 %v647_v8, %v642_v7  ;;  %vm35_vm6 = vcmp.eq.s32.totalorder %v613_v61, %v26_v17  ;;  %vm36_vm7 = vcmp.eq.s32.totalorder %v610_v60, %v27_v18  ;;  %v347_v19 = vsel %vm32_vm3, 1.0, %v404_v3 }
  0x17   :  { %181 = vmatpush.msra.mxu1 %v96_v43  ;;  %239 = vmatpush.msra.mxu3 %v97_v44  ;;  %v118_v11 = vld [vmem:[#allocation2] sm:$0xff]  ;;  %v666_v15 = vld [vmem:[#allocation2 + $0x18] sm:$0xff]  ;;  %v668_v16 = vld [vmem:[#allocation2 + $0x8] sm:$0xff]  ;;  %v693_v20 = vsel %vm33_vm4, 1.0, %v404_v3  ;;  %vm37_vm8 = vcmp.eq.s32.totalorder %v613_v61, %v27_v18  ;;  %v698_v22 = vsel %vm36_vm7, 1.0, %v404_v3  ;;  %v349_v24 = vsel %vm34_vm5, 1.0, %v404_v3 }
  0x18   :  { %153 = vmatpush.msra.mxu0 %v62_v45  ;;  %211 = vmatpush.msra.mxu2 %v63_v46  ;;  %v307_v21 = vadd.f32 %v693_v20, %v347_v19  ;;  %v701_v23 = vsel %vm37_vm8, 1.0, %v404_v3  ;;  %v709_v25 = vsel %vm35_vm6, 1.0, %v404_v3 }
  0x19   :  { %182 = vmatpush.msra.mxu1 %v94_v47  ;;  %240 = vmatpush.msra.mxu3 %v95_v48  ;;  %v313_v26 = vadd.f32 %v701_v23, %v698_v22  ;;  %v310_v27 = vadd.f32 %v709_v25, %v349_v24 }
  0x1a   :  { %154 = vmatpush.msra.mxu0 %v60_v50  ;;  %212 = vmatpush.msra.mxu2 %v61_v51 }
  0x1b   :  { %183 = vmatpush.msra.mxu1 %v92_v53  ;;  %241 = vmatpush.msra.mxu3 %v93_v54 }
  0x1c   :  { %155 = vmatpush.msra.mxu0 %v58_v55  ;;  %213 = vmatpush.msra.mxu2 %v59_v56 }
  0x1d   :  { %184 = vmatpush.msra.mxu1 %v90_v57  ;;  %242 = vmatpush.msra.mxu3 %v91_v58 }
  0x1e   :  { %156 = vmatpush.msra.mxu0 %v56_v62  ;;  %214 = vmatpush.msra.mxu2 %v57_v63 }
  0x1f   :  { %185 = vmatpush.msra.mxu1 %v88_v0  ;;  %243 = vmatpush.msra.mxu3 %v89_v1 }
  0x20   :  { %157 = vmatpush.msra.mxu0 %v54_v2  ;;  %215 = vmatpush.msra.mxu2 %v55_v4 }
  0x21   :  { %353 = vmatmul.msk.f32.vlgmr.msra.gmra.mxu0 %vm30_vm1, %v405_v9  ;;  %361 = vmatmul.msk.f32.vlgmr.msra.gmra.mxu2 %vm30_vm1, %v405_v9 }
  0x22   :  { %186 = vmatpush.msra.mxu1 %v86_v5  ;;  %244 = vmatpush.msra.mxu3 %v87_v6 }
  0x23   :  { %357 = vmatmul.msk.f32.vlgmr.msra.gmra.mxu1 %vm31_vm2, %v405_v9  ;;  %365 = vmatmul.msk.f32.vlgmr.msra.gmra.mxu3 %vm31_vm2, %v405_v9  ;;  %vm286_vm2 = vcmp.lt.s32.totalorder %v588_v52, 32 }
  0x24   :  { %403 = vset.pattern.permute.xlu1 %v406_v14  ;;  %402 = vset.pattern.permute.xlu0 %v406_v14 }
  0x25   :  { %134 = vperm.xlu1 %403, %v649_v10   ;;  %124 = vperm.xlu0 %402, %v118_v11  }
  0x26   :  { %305 = vadd.xlane.f32.xlu2 %v304_v13 }
  0x29   :  { %354 = vmatmul.msk.f32.gmra.mxu0 %vm32_vm3, %v405_v9  ;;  %362 = vmatmul.msk.f32.gmra.mxu2 %vm32_vm3, %v405_v9  ;;  %vm292_vm3 = vcmask 1040384  }
  0x2b   :  { %358 = vmatmul.msk.f32.gmra.mxu1 %vm33_vm4, %v405_v9  ;;  %366 = vmatmul.msk.f32.gmra.mxu3 %vm33_vm4, %v405_v9  ;;  %vm301_vm4 = vcmp.lt.s32.totalorder %v23_v49, 256 }
  0x2d   :  { %139 = vperm.xlu1 %403, %v666_v15   ;;  %129 = vperm.xlu0 %402, %v668_v16  }
  0x2e   :  { %308 = vadd.xlane.f32.xlu2 %v307_v21 }
  0x31   :  { %355 = vmatmul.msk.f32.gmra.mxu0 %vm34_vm5, %v405_v9  ;;  %363 = vmatmul.msk.f32.gmra.mxu2 %vm34_vm5, %v405_v9 }
  0x33   :  { %359 = vmatmul.msk.f32.gmra.mxu1 %vm35_vm6, %v405_v9  ;;  %367 = vmatmul.msk.f32.gmra.mxu3 %vm35_vm6, %v405_v9 }
  0x39   :  { %356 = vmatmul.msk.f32.gmra.mxu0 %vm36_vm7, %v405_v9  ;;  %364 = vmatmul.msk.f32.gmra.mxu2 %vm36_vm7, %v405_v9 }
  0x3b   :  { %360 = vmatmul.msk.f32.gmra.mxu1 %vm37_vm8, %v405_v9  ;;  %368 = vmatmul.msk.f32.gmra.mxu3 %vm37_vm8, %v405_v9 }
  0x57   :  { %314 = vadd.xlane.f32.xlu1 %v313_v26  ;;  %311 = vadd.xlane.f32.xlu0 %v310_v27 }
  0x97   :  { %v125_v30 = vpop.permute.xlu0 %124  ;;  %v135_v35 = vpop.permute.xlu1 %134 }
  0x99   :  { %v306_v36 = vpop.xlane.xlu2 %305 }
  0x9a   :  { %v316_v3 = vadd.f32 %v306_v36, %v118_v11 }
  0x9c   :  { %321 = vst.msk [vmem:[#allocation2] sm:$0xff] %vm17_vm0, %v316_v3  ;;  %v325_v42 = vmin.f32 %v316_v3, 4.0 }
  0x9e   :  { %v159_v28 = vpop.f32.mrf.mxu0  ;;  %v380_v46 = vceil.f32 %v325_v42  ;;  %v381_v47 = vfloor.f32 %v325_v42  ;;  %vm379_vm9 = vcmp.lt.s32.totalorder %v325_v42, 0 }
  0x9f   :  { %v130_v37 = vpop.permute.xlu0 %129  ;;  %v160_v43 = vadd.f32 %v159_v28, %v125_v30  ;;  %v140_v60 = vpop.permute.xlu1 %139 }
  0xa0   :  { %v188_v29 = vpop.f32.mrf.mxu1  ;;  %v382_v50 = vsel %vm379_vm9, %v380_v46, %v381_v47 }
  0xa1   :  { %v189_v51 = vadd.f32 %v188_v29, %v160_v43  ;;  %v383_v55 = vcvt.f32.s32 %v382_v50  ;;  %v309_v56 = vpop.xlane.xlu2 %308 }
  0xa2   :  { %v317_v59 = vadd.f32 %v309_v56, %v668_v16 }
  0xa3   :  { %333 = vst.msk [vmem:[%s752_s3] sm:$0xff] %vm17_vm0, %v383_v55  ;;  %v258_v2 = vmul.f32 %v642_v7, %v189_v51 }
  0xa4   :  { %v217_v31 = vpop.f32.mrf.mxu2  ;;  %322 = vst.msk [vmem:[#allocation2 + $0x8] sm:$0xff] %vm17_vm0, %v317_v59  ;;  %v326_v1 = vmin.f32 %v317_v59, 4.0 }
  0xa5   :  { %v218_v57 = vadd.f32 %v217_v31, %v125_v30 }
  0xa6   :  { %v162_v32 = vpop.f32.mrf.mxu0  ;;  %v246_v33 = vpop.f32.mrf.mxu3  ;;  %v385_v12 = vceil.f32 %v326_v1  ;;  %v386_v13 = vfloor.f32 %v326_v1  ;;  %vm384_vm10 = vcmp.lt.s32.totalorder %v326_v1, 0 }
  0xa7   :  { %v163_v39 = vadd.f32 %v162_v32, %v130_v37  ;;  %v247_v9 = vadd.f32 %v246_v33, %v218_v57 }
  0xa8   :  { %v191_v34 = vpop.f32.mrf.mxu1 }
  0xa9   :  { %v192_v48 = vadd.f32 %v191_v34, %v163_v39  ;;  %v259_v7 = vmul.f32 %v647_v8, %v247_v9 }
  0xab   :  { %v260_v61 = vmul.f32 %v347_v19, %v192_v48  ;;  %v387_v19 = vsel %vm384_vm10, %v385_v12, %v386_v13 }
  0xac   :  { %v220_v38 = vpop.f32.mrf.mxu2  ;;  %v388_v28 = vcvt.f32.s32 %v387_v19 }
  0xad   :  { %v221_v53 = vadd.f32 %v220_v38, %v130_v37  ;;  %v266_v16 = vadd.f32 %v260_v61, %v258_v2 }
  0xae   :  { %v165_v40 = vpop.f32.mrf.mxu0  ;;  %v249_v41 = vpop.f32.mrf.mxu3  ;;  %334 = vst.msk [vmem:[%s752_s3 + $0x8] sm:$0xff] %vm17_vm0, %v388_v28 }
  0xaf   :  { %v166_v44 = vadd.f32 %v165_v40, %v135_v35  ;;  %v250_v4 = vadd.f32 %v249_v41, %v221_v53 }
  0xb0   :  { %v194_v45 = vpop.f32.mrf.mxu1 }
  0xb1   :  { %v195_v54 = vadd.f32 %v194_v45, %v166_v44  ;;  %v261_v21 = vmul.f32 %v693_v20, %v250_v4 }
  0xb3   :  { %v262_v5 = vmul.f32 %v349_v24, %v195_v54  ;;  %v275_v33 = vadd.f32 %v261_v21, %v259_v7 }
  0xb4   :  { %v223_v58 = vpop.f32.mrf.mxu2 }
  0xb5   :  { %v224_v62 = vadd.f32 %v223_v58, %v135_v35  ;;  %v267_v26 = vadd.f32 %v266_v16, %v262_v5 }
  0xb6   :  { %v168_v63 = vpop.f32.mrf.mxu0  ;;  %v252_v0 = vpop.f32.mrf.mxu3 }
  0xb7   :  { %v169_v6 = vadd.f32 %v168_v63, %v140_v60  ;;  %v253_v17 = vadd.f32 %v252_v0, %v224_v62 }
  0xb8   :  { %v197_v11 = vpop.f32.mrf.mxu1 }
  0xb9   :  { %v198_v18 = vadd.f32 %v197_v11, %v169_v6  ;;  %v263_v24 = vmul.f32 %v709_v25, %v253_v17 }
  0xbb   :  { %v264_v27 = vmul.f32 %v698_v22, %v198_v18  ;;  %v276_v35 = vadd.f32 %v275_v33, %v263_v24 }
  0xbc   :  { %v226_v29 = vpop.f32.mrf.mxu2 }
  0xbd   :  { %v268_v30 = vadd.f32 %v267_v26, %v264_v27  ;;  %v227_v31 = vadd.f32 %v226_v29, %v140_v60 }
  0xbe   :  { %v255_v32 = vpop.f32.mrf.mxu3 }
  0xbf   :  { %v269_v34 = vrot.slane %v268_v30, 4  ;;  %v256_v20 = vadd.f32 %v255_v32, %v227_v31 }
  0xc1   :  { %v270_v36 = vadd.f32 %v269_v34, %v268_v30  ;;  %v265_v22 = vmul.f32 %v701_v23, %v256_v20 }
  0xc3   :  { %v271_v37 = vrot.slane %v270_v36, 2  ;;  %v277_v38 = vadd.f32 %v276_v35, %v265_v22 }
  0xc5   :  { %v272_v8 = vadd.f32 %v271_v37, %v270_v36  ;;  %v278_v3 = vrot.slane %v277_v38, 4 }
  0xc7   :  { %v273_v25 = vrot.slane %v272_v8, 1  ;;  %v279_v39 = vadd.f32 %v278_v3, %v277_v38 }
  0xc9   :  { %v274_v40 = vadd.f32 %v273_v25, %v272_v8  ;;  %v280_v41 = vrot.slane %v279_v39, 2 }
  0xca   :  { %v315_v42 = vpop.xlane.xlu1 %314  ;;  %v312_v43 = vpop.xlane.xlu0 %311 }
  0xcb   :  { %vm369_vm11 = vcmp.lt.s32.totalorder %v274_v40, 0  ;;  %v370_v44 = vceil.f32 %v274_v40  ;;  %v371_v45 = vfloor.f32 %v274_v40  ;;  %v281_v46 = vadd.f32 %v280_v41, %v279_v39 }
  0xcc   :  { %v319_v47 = vadd.f32 %v315_v42, %v666_v15  ;;  %v318_v48 = vadd.f32 %v312_v43, %v649_v10 }
  0xcd   :  { %v282_v50 = vrot.slane %v281_v46, 1  ;;  %v372_v23 = vsel %vm369_vm11, %v370_v44, %v371_v45 }
  0xce   :  { %324 = vst.msk [vmem:[#allocation2 + $0x18] sm:$0xff] %vm17_vm0, %v319_v47  ;;  %v328_v51 = vmin.f32 %v319_v47, 4.0  ;;  %v327_v53 = vmin.f32 %v318_v48, 4.0  ;;  %v373_v57 = vcvt.f32.s32 %v372_v23 }
  0xcf   :  { %v283_v54 = vadd.f32 %v282_v50, %v281_v46  ;;  %323 = vst.msk [vmem:[#allocation2 + $0x10] sm:$0xff] %vm17_vm0, %v318_v48 }
  0xd0   :  { %vm394_vm12 = vcmp.lt.s32.totalorder %v328_v51, 0  ;;  %v395_v55 = vceil.f32 %v328_v51  ;;  %v396_v56 = vfloor.f32 %v328_v51  ;;  %vm389_vm14 = vcmp.lt.s32.totalorder %v327_v53, 0 }
  0xd1   :  { %vm374_vm13 = vcmp.lt.s32.totalorder %v283_v54, 0  ;;  %v375_v58 = vceil.f32 %v283_v54  ;;  %v376_v59 = vfloor.f32 %v283_v54  ;;  %v390_v15 = vceil.f32 %v327_v53 }
  0xd2   :  { %v397_v60 = vsel %vm394_vm12, %v395_v55, %v396_v56  ;;  %v391_v10 = vfloor.f32 %v327_v53  ;;  %vm287_vm15 = vcmp.lt.s32.totalorder %v373_v57, 4 }
  0xd3   :  { %v377_v61 = vsel %vm374_vm13, %v375_v58, %v376_v59  ;;  %v398_v62 = vcvt.f32.s32 %v397_v60  ;;  %v289_v6 = vsel %vm287_vm15, 1, %v406_v14 }
  0xd4   :  { %v378_v63 = vcvt.f32.s32 %v377_v61  ;;  %v392_v0 = vsel %vm389_vm14, %v390_v15, %v391_v10 }
  0xd5   :  { %336 = vst.msk [vmem:[%s752_s3 + $0x18] sm:$0xff] %vm17_vm0, %v398_v62  ;;  %v393_v1 = vcvt.f32.s32 %v392_v0 }
  0xd6   :  { %vm288_vm1 = vcmp.lt.s32.totalorder %v378_v63, 4  ;;  %v296_v5 = vrot.slane %v378_v63, 7 }
  0xd7   :  { %v290_v2 = vsel %vm288_vm1, 1, %v406_v14  ;;  %335 = vst.msk [vmem:[%s752_s3 + $0x10] sm:$0xff] %vm17_vm0, %v393_v1 }
  0xd8   :  { %v291_v4 = vrot.slane %v290_v2, 7  ;;  %v297_v11 = vsel %vm292_vm3, %v373_v57, %v296_v5 }
  0xda   :  { %v293_v9 = vsel %vm292_vm3, %v289_v6, %v291_v4 }
  0xdb   :  { %vm294_vm5 = vcmp.ne.s32.totalorder %v293_v9, 0 }
  0xdc   :  { %vm295_vm6 = vmand %vm286_vm2, %vm294_vm5 }
  0xdd   :  { %v298_v12 = vsel %vm295_vm6, %v297_v11, 4294967295 }
  0xde   :  { %303 = vst.msk [vmem:[%s753_s2] sm:$0x3] %vm301_vm4, %v298_v12 }

</bundles_post_ra>
